<compile_context>
chip_gen: v6e
topology: v6e:2x2x1
jax: 0.10.0
libtpu: 0.0.40
codegen_flags: <defaults>
</compile_context>

<pallas_src>
import jax
import jax.numpy as jnp
from jax.experimental import pallas as pl
from jax.experimental.pallas import tpu as pltpu


def _copy_kernel(x_hbm_ref, o_hbm_ref, sem):
    # Identity as one bulk HBM->HBM DMA of the whole array.
    copy = pltpu.make_async_copy(x_hbm_ref, o_hbm_ref, sem)
    copy.start()
    copy.wait()


@jax.jit
def _skip_conv_copy(x):
    """Identity that materialises a fresh output buffer via a single DMA."""
    nbytes = x.size * jnp.dtype(x.dtype).itemsize
    return pl.pallas_call(
        _copy_kernel,
        out_shape=jax.ShapeDtypeStruct(x.shape, x.dtype),
        in_specs=[pl.BlockSpec(memory_space=pl.ANY)],
        out_specs=pl.BlockSpec(memory_space=pl.ANY),
        scratch_shapes=[pltpu.SemaphoreType.DMA],
        cost_estimate=pl.CostEstimate(
            flops=0, transcendentals=0, bytes_accessed=2 * nbytes
        ),
    )(x)


def skip_conv(x, edge_index=None, edge_weight=None, copy=False):
    """Pallas implementation of SkipConv.forward: returns x unchanged.

    edge_index / edge_weight are accepted for API parity but, exactly like the
    PyTorch module, do not influence the result.

    copy=False (default): zero-cost identity (returns x itself).
    copy=True: returns an identical array in a distinct buffer via a single
               whole-array HBM->HBM DMA Pallas kernel.
    """
    if not copy or x.size == 0:
        return x
    return _skip_conv_copy(x)


class SkipConv:
    """Parameter-free module mirroring the PyTorch SkipConv."""

    def __init__(self, in_channels, out_channels, bias=True):
        self.in_channels = in_channels
        self.out_channels = out_channels
        self.out_dim = out_channels

    def __call__(self, x, edge_index, edge_weight=None):
        # Forward semantics of the PyTorch module: return x unchanged.
        return skip_conv(x, edge_index, edge_weight)

    def __repr__(self):
        return "{}({}, {})".format(
            self.__class__.__name__, self.in_channels, self.out_channels
        )


if __name__ == "__main__":
    key = jax.random.PRNGKey(0)
    k_x, k_e = jax.random.split(key)

    num_nodes = 16
    in_channels = 32
    out_channels = 32
    num_edges = 8

    x = jax.random.normal(k_x, (num_nodes, in_channels), dtype=jnp.float32)
    edge_index = jax.random.randint(
        k_e, (2, num_edges), minval=0, maxval=num_nodes, dtype=jnp.int32
    )
    edge_weight = jnp.ones((num_edges,), dtype=jnp.float32)

    # Default (fast) path: pure identity, no kernel, no HBM traffic.
    module = SkipConv(in_channels, out_channels, bias=True)
    out_fast = jax.block_until_ready(module(x, edge_index, edge_weight))
    assert out_fast.shape == x.shape and out_fast.dtype == x.dtype
    assert bool(jnp.array_equal(out_fast, x))

    # Kernel path: distinct output buffer via a single whole-array DMA.
    out_copy = jax.block_until_ready(
        skip_conv(x, edge_index, edge_weight, copy=True)
    )
    assert out_copy.shape == x.shape and out_copy.dtype == x.dtype
    assert bool(jnp.array_equal(out_copy, x))

    print("KERNEL_OK")
</pallas_src>

<mosaic_0001>
module attributes {stable_mosaic.version = 11 : i64} {
  func.func @_copy_kernel(%arg0: memref<16x32xf32, #tpu.memory_space<any>>, %arg1: memref<16x32xf32, #tpu.memory_space<any>>, %arg2: memref<!tpu.dma_semaphore, #tpu.memory_space<semaphore_mem>>) attributes {dimension_semantics = [], scalar_prefetch = 0 : i64, scratch_operands = 1 : i64, tpu.core_type = #tpu.core_type<tc>} {
    tpu.enqueue_dma source(%arg0 : memref<16x32xf32, #tpu.memory_space<any>>) target(%arg1 : memref<16x32xf32, #tpu.memory_space<any>>) target_semaphore(%arg2 : memref<!tpu.dma_semaphore, #tpu.memory_space<semaphore_mem>>)
    tpu.wait_dma2 semaphore(%arg2 : memref<!tpu.dma_semaphore, #tpu.memory_space<semaphore_mem>>) src(%arg0 : memref<16x32xf32, #tpu.memory_space<any>>) dst(%arg1 : memref<16x32xf32, #tpu.memory_space<any>>)
    return
  }
}

</mosaic_0001>

<bundles_post_ra>
// kernel: _skip_conv_copy.1
= control target key start
LH: loop header
LB: loop body
LE: loop exit
PB: predicated region body
PF: predicated region fallthrough
CT: control target
= control target key end

     0   :  { %s28_s6 = smov [#allocation2]   ;;  %s29_s7 = smov 131072   ;;  %s47_s0 = inlined_call_operand.hbm [shape: f32[16,32], index: 0, kind: input, shape index: {}]   ;;  %s48_s1 = inlined_call_operand.hbm [shape: f32[16,32], index: 1, kind: output, shape index: {}]  }
   0x1   :  { %s30_s8 = smov 0  }
   0x2   :  { %12 = dma.general %s47_s0, 256, %s48_s1, %s28_s6, %s29_s7, [#allocation4], %s30_s8, 0  }
   0x3   :  { %26 = dma.done.wait [#allocation2], 256 }
   0x4   :  { %27 = vsyncadd [#allocation2], 4294967040 }
   0x5   :  { %16 = vsyncmov [#allocation2] }
   0x8   :  { %s17_s13 = vpop.sfrf %16 }
   0x9   :  { %p22_p0 = scmp.ne.s32.totalorder %s17_s13, 0 }
   0xb   :  { %21 = shalt.err (%p22_p0)  }

</bundles_post_ra>
